<compile_context>
chip_gen: v6e
topology: v6e:2x2x1
jax: 0.10.0
libtpu: 0.0.40
codegen_flags: <defaults>
</compile_context>

<pallas_src>
import jax
import jax.numpy as jnp
from jax.experimental import pallas as pl
from jax.experimental.pallas import tpu as pltpu


def _round_up(x, m):
    return ((x + m - 1) // m) * m


# ---------------------------------------------------------------------------
# Pallas kernel: fused correlation-difference matmul + |.| accumulation.
# ---------------------------------------------------------------------------
def _corr_l1_kernel(a_ref, b_ref, out_ref, acc_ref):
    """One grid step.

    a_ref   : (G, tm, P2)   rows of [A_e | A_t]   (last dim = full extent P2)
    b_ref   : (G, P2, tn)   cols of [B_e ; -B_t]  (lane dim tn, 128-dense)
    out_ref : (1, 1, 1, 1)  per-(group-block, column-tile) partial sum (f32)
    acc_ref : (G, 1, tn)    lane-dense f32 VMEM accumulator
    grid    : (num_groups, n_j, n_i), row-tile axis i innermost so the B tile
              (MXU weights) stays resident across all row tiles.
    """
    i = pl.program_id(2)

    @pl.when(i == 0)  # gate on the innermost axis ONLY (per-(g, j) partials)
    def _init():
        acc_ref[...] = jnp.zeros_like(acc_ref)

    # Fused matmul: [A_e | A_t] @ [B_e ; -B_t] == corr_enhanced - corr_target.
    diff = jnp.einsum(
        "gmp,gpn->gmn", a_ref[...], b_ref[...],
        preferred_element_type=jnp.float32)

    # Fold |diff| over the row (sublane) axis into a lane-dense accumulator:
    # vreg-row adds on the VALU plus a tiny intra-vreg sublane reduce on the
    # otherwise-idle XLU.  No per-step scalar reduce, no masked 1-lane store
    # read-modify-write on the output.
    acc_ref[...] += jnp.sum(jnp.abs(diff), axis=1, keepdims=True)

    @pl.when(i == pl.num_programs(2) - 1)
    def _finalize():
        out_ref[...] = jnp.sum(acc_ref[...]).reshape(1, 1, 1, 1)


# ---------------------------------------------------------------------------
# Host-side tiling / grouping logic.
# ---------------------------------------------------------------------------
def _pick_tile(n, cap=1024, step_overhead_cycles=600.0, elems_per_cycle=128.0):
    """Pick a lane-dense (multiple-of-128) tile for the N x N correlation.

    Balances per-grid-step overhead (~0.35 us) against padded-area work.
    Small N degenerates to a single round_up(N, 128) tile.
    Returns (tile, padded_N) with tile | padded_N.
    """
    n128 = _round_up(n, 128)
    if n128 <= cap:
        return n128, n128
    best = None
    for t in range(128, cap + 1, 128):
        n_tiles = -(-n // t)
        cost = (n_tiles * n_tiles) * (
            step_overhead_cycles + (t * t) / elems_per_cycle)
        if best is None or cost < best[0]:
            best = (cost, t, n_tiles * t)
    return best[1], best[2]


def _correlation_l1_partials(a_cat, b_cat):
    """sum |A_cat @ B_cat| per (b, c) slice, tiled over the N x N correlation.

    a_cat: (BC, N, 2P)  rows  [A_e | A_t]
    b_cat: (BC, 2P, N)  cols  [B_e ; -B_t]
    Returns a tiny (num_groups, n_j, 1, 1) f32 array of partial sums.
    """
    BC, N, P2 = a_cat.shape

    # Lane-dense tiles + zero-padding of the patch-count axis N.
    # Zero rows of A / zero cols of B contribute 0 to sum|diff|, so padding is
    # loss-neutral (the denominator uses the un-padded N outside).
    t, n_pad = _pick_tile(N)
    tm = tn = t
    if n_pad != N:
        a_cat = jnp.pad(a_cat, ((0, 0), (0, n_pad - N), (0, 0)))
        b_cat = jnp.pad(b_cat, ((0, 0), (0, 0), (0, n_pad - N)))
    n_i = n_pad // tm
    n_j = n_pad // tn

    # Generation-aware VMEM budget (v7x: 64 MiB physical, v5e/v6e: 128 MiB).
    try:
        vmem_cap = int(pltpu.get_tpu_info().vmem_capacity_bytes)
    except Exception:
        vmem_cap = 64 * 1024 * 1024       # conservative (v7x-sized) fallback
    budget = vmem_cap // 4                 # ~16 MiB on v7x, ~32 MiB on v5e/v6e

    itemsize = jnp.dtype(a_cat.dtype).itemsize
    sub = max(1, 32 // itemsize)           # sublane packing (16 bf16 / 8 f32)
    p2_lanes = _round_up(P2, 128)          # A's last dim is lane-padded in VMEM
    p2_sub = _round_up(P2, sub)

    def step_bytes(g):
        a_b = 2 * g * tm * p2_lanes * itemsize   # double-buffered A (lane-padded)
        b_b = 2 * g * p2_sub * tn * itemsize     # double-buffered B
        diff_b = 2 * g * tm * tn * 4             # f32 matmul result + |.| copy
        acc_b = g * 8 * tn * 4                   # accumulator (sublane-padded)
        return a_b + b_b + diff_b + acc_b

    # Group as many (b, c) slices per grid step as the budget allows
    # (collapses the toy problem into a single grid step).
    G = BC
    while G > 1 and step_bytes(G) > budget:
        G -= 1
        while BC % G != 0:
            G -= 1
    num_groups = BC // G

    # Communicate the actual working set to Mosaic (+50% headroom, 16 MiB floor).
    vmem_limit = int(min(vmem_cap * 3 // 4,
                         max(step_bytes(G) * 3 // 2, 16 * 1024 * 1024)))

    # Row-tile axis i innermost -> the B block (indexed by j only) stays
    # resident as MXU weights across all row tiles of a column stripe.
    grid = (num_groups, n_j, n_i)

    return pl.pallas_call(
        _corr_l1_kernel,
        out_shape=jax.ShapeDtypeStruct((num_groups, n_j, 1, 1), jnp.float32),
        grid_spec=pltpu.PrefetchScalarGridSpec(
            num_scalar_prefetch=0,
            grid=grid,
            in_specs=[
                pl.BlockSpec((G, tm, P2), lambda g, j, i: (g, i, 0)),
                pl.BlockSpec((G, P2, tn), lambda g, j, i: (g, 0, j)),
            ],
            out_specs=pl.BlockSpec((1, 1, 1, 1), lambda g, j, i: (g, j, 0, 0)),
            scratch_shapes=[pltpu.VMEM((G, 1, tn), jnp.float32)],
        ),
        compiler_params=pltpu.CompilerParams(
            dimension_semantics=("parallel", "parallel", "arbitrary"),
            vmem_limit_bytes=vmem_limit),
    )(a_cat, b_cat)


# ---------------------------------------------------------------------------
# Forward pass (JAX glue + Pallas hot path).
# ---------------------------------------------------------------------------
def _extract_patches(x, kernel_size, stride):
    # torch: x.unfold(2, K, S).unfold(3, K, S) -> (B, C, Tp, Fp, K, K)
    B, C, T, Fq = x.shape
    Tp = (T - kernel_size) // stride + 1
    Fp = (Fq - kernel_size) // stride + 1
    if stride == kernel_size:
        # Non-overlapping patches: pure reshape/transpose (layout-only).
        x_c = x[:, :, : Tp * kernel_size, : Fp * kernel_size]
        patches = x_c.reshape(B, C, Tp, kernel_size, Fp, kernel_size)
        return patches.transpose(0, 1, 2, 4, 3, 5)
    # General stride: gather fallback (wrapper-side only).
    kk = jnp.arange(kernel_size)
    t_idx = jnp.arange(Tp)[:, None] * stride + kk[None, :]   # (Tp, K)
    f_idx = jnp.arange(Fp)[:, None] * stride + kk[None, :]   # (Fp, K)
    return x[:, :, t_idx[:, None, :, None], f_idx[None, :, None, :]]


def speech_loss(enhanced_audio, target_audio, kernel_size, stride,
                operand_dtype=jnp.bfloat16):
    B, C, T, Fq = enhanced_audio.shape

    def _normalize(x):
        # torch .std() default is unbiased (ddof=1)
        return (x - jnp.mean(x)) / jnp.std(x, ddof=1)

    enhanced = _normalize(enhanced_audio)
    target = _normalize(target_audio)

    time_padding = (kernel_size - T % kernel_size) % kernel_size
    frequency_padding = (kernel_size - Fq % kernel_size) % kernel_size
    # Faithful to torch F.pad(x, (0, time_padding, 0, frequency_padding)):
    # last dim (frequency) padded by `time_padding`,
    # second-to-last dim (time) padded by `frequency_padding`.
    pad_cfg = ((0, 0), (0, 0), (0, frequency_padding), (0, time_padding))
    enhanced_p = jnp.pad(enhanced, pad_cfg)
    target_p = jnp.pad(target, pad_cfg)

    pe = _extract_patches(enhanced_p, kernel_size, stride)  # (B,C,Tp,Fp,K,K)
    pt = _extract_patches(target_p, kernel_size, stride)
    _, _, Tp, Fp, K, _ = pe.shape
    N = Tp * Fp
    P = K * K
    BC = B * C

    # torch reshape(B, C, -1, K*K) and reshape(B, C, K*K, -1) of the same
    # contiguous patch tensor (row-major), per (b, c) slice.
    a_e = pe.reshape(BC, N, P)
    b_e = pe.reshape(BC, P, N)
    a_t = pt.reshape(BC, N, P)
    b_t = pt.reshape(BC, P, N)

    # Fuse the two correlations: [A_e | A_t] @ [B_e ; -B_t] = corr_e - corr_t.
    # bf16 operands (f32 MXU accumulation) halve DMA bytes; pass
    # operand_dtype=jnp.float32 for strict-parity validation runs.
    a_cat = jnp.concatenate([a_e, a_t], axis=-1).astype(operand_dtype)  # (BC,N,2P)
    b_cat = jnp.concatenate([b_e, -b_t], axis=1).astype(operand_dtype)  # (BC,2P,N)

    partials = _correlation_l1_partials(a_cat, b_cat)
    correlation_loss = jnp.sum(partials) / jnp.float32(BC * N * N)
    return correlation_loss * jnp.float32(0.01)


if __name__ == "__main__":
    # Module "parameters" (constructor args), chosen deterministically.
    kernel_size = 4
    stride = 4

    B, C, T, Fq = 2, 4, 16, 16
    key = jax.random.PRNGKey(0)
    k1, k2 = jax.random.split(key)
    enhanced_audio = jax.random.normal(k1, (B, C, T, Fq), dtype=jnp.float32)
    target_audio = jax.random.normal(k2, (B, C, T, Fq), dtype=jnp.float32)

    loss_fn = jax.jit(speech_loss, static_argnums=(2, 3))
    loss = loss_fn(enhanced_audio, target_audio, kernel_size, stride)
    jax.block_until_ready(loss)
    print("KERNEL_OK")
</pallas_src>

<mosaic_0001>
module attributes {stable_mosaic.version = 11 : i64} {
  func.func @_corr_l1_kernel(%arg0: i32, %arg1: i32, %arg2: i32, %arg3: memref<8x128x32xbf16, #tpu.memory_space<vmem>>, %arg4: memref<8x32x128xbf16, #tpu.memory_space<vmem>>, %arg5: memref<1x1x1x1xf32, #tpu.memory_space<vmem>>, %arg6: memref<8x1x128xf32, #tpu.memory_space<vmem>>) attributes {dimension_semantics = [#tpu.dimension_semantics<parallel>, #tpu.dimension_semantics<parallel>, #tpu.dimension_semantics<arbitrary>], iteration_bounds = array<i64: 1, 1, 1>, scalar_prefetch = 0 : i64, scratch_operands = 1 : i64, tpu.core_type = #tpu.core_type<tc>, window_params = [{transform_indices = @transform_0, window_bounds = array<i64: 8, 128, 32>}, {transform_indices = @transform_1, window_bounds = array<i64: 8, 32, 128>}, {transform_indices = @transform_2, window_bounds = array<i64: 1, 1, 1, 1>}]} {
    %c0_i32 = arith.constant 0 : i32
    %0 = arith.cmpi eq, %arg2, %c0_i32 : i32
    %1 = arith.extui %0 : i1 to i32
    %c0_i32_0 = arith.constant 0 : i32
    %2 = arith.cmpi ne, %1, %c0_i32_0 : i32
    scf.if %2 {
      %cst_15 = arith.constant 0.000000e+00 : f32
      %15 = vector.broadcast %cst_15 : f32 to vector<8x1x128xf32>
      %c0_16 = arith.constant 0 : index
      %c0_17 = arith.constant 0 : index
      %c0_18 = arith.constant 0 : index
      %16 = vector.load %arg6[%c0_16, %c0_17, %c0_18] : memref<8x1x128xf32, #tpu.memory_space<vmem>>, vector<8x1x128xf32>
      tpu.vector_store %arg6[%c0_16, %c0_17, %c0_18], %15 {strides = array<i32>} : memref<8x1x128xf32, #tpu.memory_space<vmem>>, vector<8x1x128xf32>,
    } else {
    }
    %c0 = arith.constant 0 : index
    %c0_1 = arith.constant 0 : index
    %c0_2 = arith.constant 0 : index
    %3 = vector.load %arg3[%c0, %c0_1, %c0_2] : memref<8x128x32xbf16, #tpu.memory_space<vmem>>, vector<8x128x32xbf16>
    %c0_3 = arith.constant 0 : index
    %c0_4 = arith.constant 0 : index
    %c0_5 = arith.constant 0 : index
    %4 = vector.load %arg4[%c0_3, %c0_4, %c0_5] : memref<8x32x128xbf16, #tpu.memory_space<vmem>>, vector<8x32x128xbf16>
    "tpu.trace_start"() <{level = 10 : i32, message = "gmp,gpn->gmn"}> : () -> ()
    %cst = arith.constant dense<0.000000e+00> : vector<8x128x128xf32>
    %5 = tpu.matmul %3, %4, %cst {dimension_numbers = #tpu.dot_dimension_numbers<[2], [1], [1], [2], [0, 0, 0, 1, 1, 2], [0], [0]>} : vector<8x128x32xbf16>, vector<8x32x128xbf16>, vector<8x128x128xf32> -> vector<8x128x128xf32>
    "tpu.trace_stop"() : () -> ()
    %c0_6 = arith.constant 0 : index
    %c0_7 = arith.constant 0 : index
    %c0_8 = arith.constant 0 : index
    %6 = vector.load %arg6[%c0_6, %c0_7, %c0_8] : memref<8x1x128xf32, #tpu.memory_space<vmem>>, vector<8x1x128xf32>
    %7 = math.absf %5 : vector<8x128x128xf32>
    %cst_9 = arith.constant dense<0.000000e+00> : vector<8x128xf32>
    %8 = vector.multi_reduction <add>, %7, %cst_9 [1] : vector<8x128x128xf32> to vector<8x128xf32>
    %9 = vector.shape_cast %8 : vector<8x128xf32> to vector<8x1x128xf32>
    %10 = arith.addf %6, %9 : vector<8x1x128xf32>
    %c0_10 = arith.constant 0 : index
    %c0_11 = arith.constant 0 : index
    %c0_12 = arith.constant 0 : index
    %11 = vector.load %arg6[%c0_10, %c0_11, %c0_12] : memref<8x1x128xf32, #tpu.memory_space<vmem>>, vector<8x1x128xf32>
    tpu.vector_store %arg6[%c0_10, %c0_11, %c0_12], %10 {strides = array<i32>} : memref<8x1x128xf32, #tpu.memory_space<vmem>>, vector<8x1x128xf32>,
    %c0_i32_13 = arith.constant 0 : i32
    %12 = arith.cmpi eq, %arg2, %c0_i32_13 : i32
    %13 = arith.extui %12 : i1 to i32
    %c0_i32_14 = arith.constant 0 : i32
    %14 = arith.cmpi ne, %13, %c0_i32_14 : i32
    scf.if %14 {
      %c0_15 = arith.constant 0 : index
      %c0_16 = arith.constant 0 : index
      %c0_17 = arith.constant 0 : index
      %15 = vector.load %arg6[%c0_15, %c0_16, %c0_17] : memref<8x1x128xf32, #tpu.memory_space<vmem>>, vector<8x1x128xf32>
      %16 = vector.shape_cast %15 : vector<8x1x128xf32> to vector<1x8x1x128xf32>
      %cst_18 = arith.constant dense<0.000000e+00> : vector<1xf32>
      %17 = vector.multi_reduction <add>, %16, %cst_18 [1, 2, 3] : vector<1x8x1x128xf32> to vector<1xf32>
      %18 = vector.shape_cast %17 : vector<1xf32> to vector<1x1x1x1xf32>
      %19 = vector.extract %18[0, 0, 0, 0] : f32 from vector<1x1x1x1xf32>
      %20 = vector.broadcast %19 : f32 to vector<1x1x1x1xf32>
      %c0_19 = arith.constant 0 : index
      %c0_20 = arith.constant 0 : index
      %c0_21 = arith.constant 0 : index
      %c0_22 = arith.constant 0 : index
      %21 = vector.load %arg5[%c0_19, %c0_20, %c0_21, %c0_22] : memref<1x1x1x1xf32, #tpu.memory_space<vmem>>, vector<1x1x1x1xf32>
      tpu.vector_store %arg5[%c0_19, %c0_20, %c0_21, %c0_22], %20 {strides = array<i32>} : memref<1x1x1x1xf32, #tpu.memory_space<vmem>>, vector<1x1x1x1xf32>,
    } else {
    }
    return
  }
  func.func @transform_0(%arg0: i32, %arg1: i32, %arg2: i32) -> (i32, i32, i32) {
    %c0_i32 = arith.constant 0 : i32
    %c0_i32_0 = arith.constant 0 : i32
    return %arg0, %arg2, %c0_i32 : i32, i32, i32
  }
  func.func @transform_1(%arg0: i32, %arg1: i32, %arg2: i32) -> (i32, i32, i32) {
    %c0_i32 = arith.constant 0 : i32
    %c0_i32_0 = arith.constant 0 : i32
    return %arg0, %c0_i32, %arg1 : i32, i32, i32
  }
  func.func @transform_2(%arg0: i32, %arg1: i32, %arg2: i32) -> (i32, i32, i32, i32) {
    %c0_i32 = arith.constant 0 : i32
    %c0_i32_0 = arith.constant 0 : i32
    %c0_i32_1 = arith.constant 0 : i32
    return %arg0, %arg1, %c0_i32, %c0_i32_0 : i32, i32, i32, i32
  }
}

</mosaic_0001>

<bundles_post_ra>
// kernel: speech_loss.1
= control target key start
LH: loop header
LB: loop body
LE: loop exit
PB: predicated region body
PF: predicated region fallthrough
CT: control target
= control target key end

     0   :  { %vm237_vm0 = vcmask 261120   ;;  %s2765_s0 = inlined_call_operand.vmem [shape: bf16[8,128,32], index: 0, kind: input, shape index: {}]   ;;  %s2766_s1 = inlined_call_operand.vmem [shape: bf16[8,32,128], index: 1, kind: input, shape index: {}]   ;;  %s2767_s2 = inlined_call_operand.hbm [shape: f32[1,1,1,1], index: 2, kind: output, shape index: {}]  }
   0x1   :  { %v2331_v0 = vld [vmem:[%s2766_s1 + $0x8] sm:$0xff]   ;;  %v2332_v1 = vld [vmem:[%s2766_s1 + $0x18] sm:$0xff]   ;;  %v2333_v2 = vld [vmem:[%s2766_s1] sm:$0xff]  }
   0x2   :  { %2167 = vmatprep.subr.bf16.mxu0 %v2331_v0  ;;  %2187 = vmatprep.subr.bf16.mxu1 %v2332_v1  ;;  %v2334_v3 = vld [vmem:[%s2766_s1 + $0x10] sm:$0xff]   ;;  %v2335_v4 = vld [vmem:[%s2765_s0] sm:$0xff]   ;;  %v2337_v6 = vld [vmem:[%s2765_s0 + $0x8] sm:$0xff]  }
   0x3   :  { %2168 = vmatpush3.bf16.msra.mxu0 %v2331_v0  ;;  %2188 = vmatpush3.bf16.msra.mxu1 %v2332_v1  ;;  %v2336_v5 = vld [vmem:[%s2765_s0 + $0x40] sm:$0xff]   ;;  %v2338_v7 = vld [vmem:[%s2765_s0 + $0x48] sm:$0xff]   ;;  %v2340_v9 = vld [vmem:[%s2766_s1 + $0x38] sm:$0xff]  }
   0x4   :  { %2169 = vmatprep.subr.bf16.mxu0 %v2333_v2  ;;  %2189 = vmatprep.subr.bf16.mxu1 %v2334_v3  ;;  %v2339_v8 = vld [vmem:[%s2766_s1 + $0x28] sm:$0xff]   ;;  %v2341_v10 = vld [vmem:[%s2765_s0 + $0x10] sm:$0xff]   ;;  %v2343_v12 = vld [vmem:[%s2765_s0 + $0x18] sm:$0xff]  }
   0x5   :  { %2171 = vmatprep.mubr.msk.bf16.mxu0 %vm237_vm0, %v2335_v4  ;;  %2191 = vmatprep.mubr.msk.bf16.mxu1 %vm237_vm0, %v2336_v5  ;;  %v2342_v11 = vld [vmem:[%s2765_s0 + $0x50] sm:$0xff]   ;;  %v2344_v13 = vld [vmem:[%s2765_s0 + $0x58] sm:$0xff]   ;;  %v2345_v14 = vld [vmem:[%s2765_s0 + $0x20] sm:$0xff]  }
   0x6   :  { %v2346_v15 = vld [vmem:[%s2765_s0 + $0x60] sm:$0xff]   ;;  %v2350_v17 = vld [vmem:[%s2766_s1 + $0x30] sm:$0xff]   ;;  %v2347_v18 = vld [vmem:[%s2765_s0 + $0x28] sm:$0xff]  }
   0x7   :  { %2170 = vmatpush3.bf16.msra.mxu0 %v2333_v2  ;;  %2190 = vmatpush3.bf16.msra.mxu1 %v2334_v3  ;;  %v2349_v16 = vld [vmem:[%s2766_s1 + $0x20] sm:$0xff]   ;;  %v2348_v19 = vld [vmem:[%s2765_s0 + $0x68] sm:$0xff]   ;;  %v2351_v20 = vld [vmem:[%s2765_s0 + $0x30] sm:$0xff]  }
   0x8   :  { %2207 = vmatprep.subr.bf16.mxu0 %v2339_v8  ;;  %2227 = vmatprep.subr.bf16.mxu1 %v2340_v9  ;;  %v2352_v21 = vld [vmem:[%s2765_s0 + $0x70] sm:$0xff]   ;;  %v2353_v22 = vld [vmem:[%s2765_s0 + $0x38] sm:$0xff]   ;;  %v2359_v23 = vld [vmem:[%s2766_s1 + $0x48] sm:$0xff]  }
   0x9   :  { %v2360_v24 = vld [vmem:[%s2766_s1 + $0x58] sm:$0xff]   ;;  %v2355_v26 = vld [vmem:[%s2765_s0 + $0x80] sm:$0xff]   ;;  %v2357_v28 = vld [vmem:[%s2765_s0 + $0x88] sm:$0xff]  }
   0xa   :  { %2172 = vmatmul.mubr.msk.bf16.vlgmr.msra.gmra.mxu0 %vm237_vm0, %v2337_v6  ;;  %2192 = vmatmul.mubr.msk.bf16.vlgmr.msra.gmra.mxu1 %vm237_vm0, %v2338_v7  ;;  %v2354_v25 = vld [vmem:[%s2765_s0 + $0x78] sm:$0xff]   ;;  %v2356_v27 = vld [vmem:[%s2765_s0 + $0xc0] sm:$0xff]   ;;  %v2358_v29 = vld [vmem:[%s2765_s0 + $0xc8] sm:$0xff]  }
   0xb   :  { %2208 = vmatpush3.bf16.msra.mxu0 %v2339_v8  ;;  %2175 = vmatprep.mubr.msk.bf16.mxu0 %vm237_vm0, %v2341_v10  ;;  %v2361_v30 = vld [vmem:[%s2765_s0 + $0x90] sm:$0xff]   ;;  %v2369_v32 = vld [vmem:[%s2766_s1 + $0x40] sm:$0xff]   ;;  %v2363_v34 = vld [vmem:[%s2765_s0 + $0x98] sm:$0xff]  }
   0xc   :  { %2228 = vmatpush3.bf16.msra.mxu1 %v2340_v9  ;;  %2195 = vmatprep.mubr.msk.bf16.mxu1 %vm237_vm0, %v2342_v11  ;;  %v2362_v31 = vld [vmem:[%s2765_s0 + $0xd0] sm:$0xff]   ;;  %v2364_v35 = vld [vmem:[%s2765_s0 + $0xd8] sm:$0xff]   ;;  %v2365_v36 = vld [vmem:[%s2765_s0 + $0xa0] sm:$0xff]  }
   0xd   :  { %2209 = vmatprep.subr.bf16.mxu0 %v2349_v16  ;;  %2229 = vmatprep.subr.bf16.mxu1 %v2350_v17  ;;  %v2370_v33 = vld [vmem:[%s2766_s1 + $0x50] sm:$0xff]   ;;  %v2366_v37 = vld [vmem:[%s2765_s0 + $0xe0] sm:$0xff]   ;;  %v2379_v38 = vld [vmem:[%s2766_s1 + $0x68] sm:$0xff]  }
   0xe   :  { %v2380_v39 = vld [vmem:[%s2766_s1 + $0x78] sm:$0xff]   ;;  %v2367_v40 = vld [vmem:[%s2765_s0 + $0xa8] sm:$0xff]   ;;  %v2371_v42 = vld [vmem:[%s2765_s0 + $0xb0] sm:$0xff]  }
   0xf   :  { %2210 = vmatpush3.bf16.msra.mxu0 %v2349_v16  ;;  %v2368_v41 = vld [vmem:[%s2765_s0 + $0xe8] sm:$0xff]   ;;  %v2372_v43 = vld [vmem:[%s2765_s0 + $0xf0] sm:$0xff]   ;;  %v2373_v44 = vld [vmem:[%s2765_s0 + $0xb8] sm:$0xff]  }
  0x10   :  { %2230 = vmatpush3.bf16.msra.mxu1 %v2350_v17  ;;  %2247 = vmatprep.subr.bf16.mxu0 %v2359_v23  ;;  %v2374_v45 = vld [vmem:[%s2765_s0 + $0xf8] sm:$0xff]   ;;  %v2375_v46 = vld [vmem:[%s2765_s0 + $0x100] sm:$0xff]   ;;  %v2377_v48 = vld [vmem:[%s2765_s0 + $0x108] sm:$0xff]  }
  0x11   :  { %2267 = vmatprep.subr.bf16.mxu1 %v2360_v24  ;;  %v2376_v47 = vld [vmem:[%s2765_s0 + $0x140] sm:$0xff]   ;;  %v2378_v49 = vld [vmem:[%s2765_s0 + $0x148] sm:$0xff]   ;;  %v2381_v50 = vld [vmem:[%s2765_s0 + $0x110] sm:$0xff]  }
  0x12   :  { %2176 = vmatmul.mubr.msk.bf16.gmra.mxu0 %vm237_vm0, %v2343_v12  ;;  %2196 = vmatmul.mubr.msk.bf16.gmra.mxu1 %vm237_vm0, %v2344_v13  ;;  %v2382_v51 = vld [vmem:[%s2765_s0 + $0x150] sm:$0xff]   ;;  %v2389_v52 = vld [vmem:[%s2766_s1 + $0x60] sm:$0xff]   ;;  %v2383_v54 = vld [vmem:[%s2765_s0 + $0x118] sm:$0xff]  }
  0x13   :  { %2179 = vmatprep.mubr.msk.bf16.mxu0 %vm237_vm0, %v2345_v14  ;;  %2199 = vmatprep.mubr.msk.bf16.mxu1 %vm237_vm0, %v2346_v15  ;;  %v2390_v53 = vld [vmem:[%s2766_s1 + $0x70] sm:$0xff]   ;;  %v2384_v55 = vld [vmem:[%s2765_s0 + $0x158] sm:$0xff]   ;;  %v2385_v56 = vld [vmem:[%s2765_s0 + $0x120] sm:$0xff]  }
  0x14   :  { %v2386_v57 = vld [vmem:[%s2765_s0 + $0x160] sm:$0xff]  }
  0x1a   :  { %2180 = vmatmul.mubr.msk.bf16.gmra.mxu0 %vm237_vm0, %v2347_v18  ;;  %2200 = vmatmul.mubr.msk.bf16.gmra.mxu1 %vm237_vm0, %v2348_v19 }
  0x1b   :  { %2183 = vmatprep.mubr.msk.bf16.mxu0 %vm237_vm0, %v2351_v20  ;;  %2203 = vmatprep.mubr.msk.bf16.mxu1 %vm237_vm0, %v2352_v21 }
  0x22   :  { %2184 = vmatmul.mubr.msk.bf16.gmra.mxu0 %vm237_vm0, %v2353_v22  ;;  %2204 = vmatmul.mubr.msk.bf16.gmra.mxu1 %vm237_vm0, %v2354_v25 }
  0x23   :  { %2211 = vmatprep.mubr.msk.bf16.mxu0 %vm237_vm0, %v2355_v26  ;;  %2231 = vmatprep.mubr.msk.bf16.mxu1 %vm237_vm0, %v2356_v27 }
  0x2a   :  { %2212 = vmatmul.mubr.msk.bf16.vlgmr.msra.gmra.mxu0 %vm237_vm0, %v2357_v28  ;;  %2232 = vmatmul.mubr.msk.bf16.vlgmr.msra.gmra.mxu1 %vm237_vm0, %v2358_v29 }
  0x2b   :  { %2248 = vmatpush3.bf16.msra.mxu0 %v2359_v23  ;;  %2268 = vmatpush3.bf16.msra.mxu1 %v2360_v24 }
  0x2c   :  { %2215 = vmatprep.mubr.msk.bf16.mxu0 %vm237_vm0, %v2361_v30  ;;  %2235 = vmatprep.mubr.msk.bf16.mxu1 %vm237_vm0, %v2362_v31 }
  0x2d   :  { %2249 = vmatprep.subr.bf16.mxu0 %v2369_v32  ;;  %2269 = vmatprep.subr.bf16.mxu1 %v2370_v33 }
  0x2f   :  { %2250 = vmatpush3.bf16.msra.mxu0 %v2369_v32  ;;  %2270 = vmatpush3.bf16.msra.mxu1 %v2370_v33 }
  0x30   :  { %2287 = vmatprep.subr.bf16.mxu0 %v2379_v38  ;;  %2307 = vmatprep.subr.bf16.mxu1 %v2380_v39 }
  0x32   :  { %2216 = vmatmul.mubr.msk.bf16.gmra.mxu0 %vm237_vm0, %v2363_v34  ;;  %2236 = vmatmul.mubr.msk.bf16.gmra.mxu1 %vm237_vm0, %v2364_v35 }
  0x33   :  { %2219 = vmatprep.mubr.msk.bf16.mxu0 %vm237_vm0, %v2365_v36  ;;  %2239 = vmatprep.mubr.msk.bf16.mxu1 %vm237_vm0, %v2366_v37 }
  0x3a   :  { %2220 = vmatmul.mubr.msk.bf16.gmra.mxu0 %vm237_vm0, %v2367_v40  ;;  %2240 = vmatmul.mubr.msk.bf16.gmra.mxu1 %vm237_vm0, %v2368_v41 }
  0x3b   :  { %2223 = vmatprep.mubr.msk.bf16.mxu0 %vm237_vm0, %v2371_v42  ;;  %2243 = vmatprep.mubr.msk.bf16.mxu1 %vm237_vm0, %v2372_v43 }
  0x42   :  { %2224 = vmatmul.mubr.msk.bf16.gmra.mxu0 %vm237_vm0, %v2373_v44  ;;  %2244 = vmatmul.mubr.msk.bf16.gmra.mxu1 %vm237_vm0, %v2374_v45 }
  0x43   :  { %2251 = vmatprep.mubr.msk.bf16.mxu0 %vm237_vm0, %v2375_v46  ;;  %2271 = vmatprep.mubr.msk.bf16.mxu1 %vm237_vm0, %v2376_v47 }
  0x4a   :  { %2252 = vmatmul.mubr.msk.bf16.vlgmr.msra.gmra.mxu0 %vm237_vm0, %v2377_v48  ;;  %2272 = vmatmul.mubr.msk.bf16.vlgmr.msra.gmra.mxu1 %vm237_vm0, %v2378_v49 }
  0x4b   :  { %2288 = vmatpush3.bf16.msra.mxu0 %v2379_v38  ;;  %2308 = vmatpush3.bf16.msra.mxu1 %v2380_v39 }
  0x4c   :  { %2255 = vmatprep.mubr.msk.bf16.mxu0 %vm237_vm0, %v2381_v50  ;;  %2275 = vmatprep.mubr.msk.bf16.mxu1 %vm237_vm0, %v2382_v51 }
  0x4d   :  { %2289 = vmatprep.subr.bf16.mxu0 %v2389_v52  ;;  %2309 = vmatprep.subr.bf16.mxu1 %v2390_v53 }
  0x4f   :  { %2290 = vmatpush3.bf16.msra.mxu0 %v2389_v52  ;;  %2310 = vmatpush3.bf16.msra.mxu1 %v2390_v53 }
  0x50   :  { %7 = vsyncpa [#allocation4], 0  ;;  %v2387_v58 = vld [vmem:[%s2765_s0 + $0x128] sm:$0xff]   ;;  %v2391_v60 = vld [vmem:[%s2765_s0 + $0x130] sm:$0xff]   ;;  %v2433_v6 = vmov 0.0   ;;  %vm1901_vm1 = vcmask 1040384  }
  0x51   :  { %v2388_v59 = vld [vmem:[%s2765_s0 + $0x168] sm:$0xff]   ;;  %v2392_v61 = vld [vmem:[%s2765_s0 + $0x170] sm:$0xff]   ;;  %v2393_v62 = vld [vmem:[%s2765_s0 + $0x138] sm:$0xff]   ;;  %17 = vst [vmem:[#allocation2] sm:$0x1] %v2433_v6  ;;  %vm1927_vm2 = vcmask 0  }
  0x52   :  { %2256 = vmatmul.mubr.msk.bf16.gmra.mxu0 %vm237_vm0, %v2383_v54  ;;  %2276 = vmatmul.mubr.msk.bf16.gmra.mxu1 %vm237_vm0, %v2384_v55  ;;  %v2394_v63 = vld [vmem:[%s2765_s0 + $0x178] sm:$0xff]   ;;  %v2395_v0 = vld [vmem:[%s2765_s0 + $0x180] sm:$0xff]   ;;  %v2397_v2 = vld [vmem:[%s2765_s0 + $0x188] sm:$0xff]   ;;  %18 = vst [vmem:[#allocation2 + $0x1] sm:$0x1] %v2433_v6 }
  0x53   :  { %2259 = vmatprep.mubr.msk.bf16.mxu0 %vm237_vm0, %v2385_v56  ;;  %2279 = vmatprep.mubr.msk.bf16.mxu1 %vm237_vm0, %v2386_v57  ;;  %v2396_v1 = vld [vmem:[%s2765_s0 + $0x1c0] sm:$0xff]   ;;  %v2398_v3 = vld [vmem:[%s2765_s0 + $0x1c8] sm:$0xff]   ;;  %v2399_v4 = vld [vmem:[%s2765_s0 + $0x190] sm:$0xff]   ;;  %19 = vst [vmem:[#allocation2 + $0x2] sm:$0x1] %v2433_v6 }
  0x54   :  { %v2400_v5 = vld [vmem:[%s2765_s0 + $0x1d0] sm:$0xff]   ;;  %20 = vst [vmem:[#allocation2 + $0x3] sm:$0x1] %v2433_v6  ;;  %21 = vst [vmem:[#allocation2 + $0x4] sm:$0x1] %v2433_v6  ;;  %v2401_v7 = vld [vmem:[%s2765_s0 + $0x198] sm:$0xff]  }
  0x55   :  { %22 = vst [vmem:[#allocation2 + $0x5] sm:$0x1] %v2433_v6  ;;  %23 = vst [vmem:[#allocation2 + $0x6] sm:$0x1] %v2433_v6  ;;  %v2402_v8 = vld [vmem:[%s2765_s0 + $0x1d8] sm:$0xff]   ;;  %v2403_v9 = vld [vmem:[%s2765_s0 + $0x1a0] sm:$0xff]  }
  0x56   :  { %24 = vst [vmem:[#allocation2 + $0x7] sm:$0x1] %v2433_v6  ;;  %v2404_v10 = vld [vmem:[%s2765_s0 + $0x1e0] sm:$0xff]   ;;  %v2405_v11 = vld [vmem:[%s2765_s0 + $0x1a8] sm:$0xff]   ;;  %v2407_v13 = vld [vmem:[%s2765_s0 + $0x1b0] sm:$0xff]  }
  0x57   :  { %v2406_v12 = vld [vmem:[%s2765_s0 + $0x1e8] sm:$0xff]   ;;  %v2408_v14 = vld [vmem:[%s2765_s0 + $0x1f0] sm:$0xff]   ;;  %v2409_v15 = vld [vmem:[%s2765_s0 + $0x1b8] sm:$0xff]  }
  0x58   :  { %v2410_v16 = vld [vmem:[%s2765_s0 + $0x1f8] sm:$0xff]   ;;  %s2434_s0 = smov [#allocation3]  }
  0x59   :  { %s1935_s27 = sshll.u32 %s2434_s0, 4  ;;  %s1936_s27 = int_to_ptr.vmem [resolvable:$true] %s1935_s27 }
  0x5a   :  { %2260 = vmatmul.mubr.msk.bf16.gmra.mxu0 %vm237_vm0, %v2387_v58  ;;  %2280 = vmatmul.mubr.msk.bf16.gmra.mxu1 %vm237_vm0, %v2388_v59  ;;  %s2411_s29 = scalar_lea.vmem %s1936_s27, 16  ;;  %s2415_s30 = scalar_lea.vmem %s1936_s27, 32 }
  0x5b   :  { %2263 = vmatprep.mubr.msk.bf16.mxu0 %vm237_vm0, %v2391_v60  ;;  %2283 = vmatprep.mubr.msk.bf16.mxu1 %vm237_vm0, %v2392_v61  ;;  %p2412_p0 = scmp.ne.s32.totalorder %s1936_s27, %s2411_s29  ;;  %p2416_p1 = scmp.lt.s32.totalorder %s1936_s27, %s1936_s27 }
  0x5c   :  { %p2417_p2 = scmp.lt.s32.totalorder %s2415_s30, %s2411_s29 }
  0x5e   :  { %p2418_p3 = por %p2417_p2, %p2416_p1 }
  0x60   :  { %p2419_p4 = pnand %p2418_p3, %p2412_p0 }
  0x62   :  { %2264 = vmatmul.mubr.msk.bf16.gmra.mxu0 %vm237_vm0, %v2393_v62  ;;  %2284 = vmatmul.mubr.msk.bf16.gmra.mxu1 %vm237_vm0, %v2394_v63 }
  0x63   :  { %2291 = vmatprep.mubr.msk.bf16.mxu0 %vm237_vm0, %v2395_v0  ;;  %2311 = vmatprep.mubr.msk.bf16.mxu1 %vm237_vm0, %v2396_v1 }
  0x6a   :  { %2292 = vmatmul.mubr.msk.bf16.vlgmr.msra.gmra.mxu0 %vm237_vm0, %v2397_v2  ;;  %2312 = vmatmul.mubr.msk.bf16.vlgmr.msra.gmra.mxu1 %vm237_vm0, %v2398_v3 }
  0x6b   :  { %2295 = vmatprep.mubr.msk.bf16.mxu0 %vm237_vm0, %v2399_v4  ;;  %2315 = vmatprep.mubr.msk.bf16.mxu1 %vm237_vm0, %v2400_v5 }
  0x72   :  { %2296 = vmatmul.mubr.msk.bf16.gmra.mxu0 %vm237_vm0, %v2401_v7  ;;  %2316 = vmatmul.mubr.msk.bf16.gmra.mxu1 %vm237_vm0, %v2402_v8 }
  0x73   :  { %2299 = vmatprep.mubr.msk.bf16.mxu0 %vm237_vm0, %v2403_v9  ;;  %2319 = vmatprep.mubr.msk.bf16.mxu1 %vm237_vm0, %v2404_v10 }
  0x7a   :  { %2300 = vmatmul.mubr.msk.bf16.gmra.mxu0 %vm237_vm0, %v2405_v11  ;;  %2320 = vmatmul.mubr.msk.bf16.gmra.mxu1 %vm237_vm0, %v2406_v12 }
  0x7b   :  { %2303 = vmatprep.mubr.msk.bf16.mxu0 %vm237_vm0, %v2407_v13  ;;  %2323 = vmatprep.mubr.msk.bf16.mxu1 %vm237_vm0, %v2408_v14 }
  0x82   :  { %2304 = vmatmul.mubr.msk.bf16.gmra.mxu0 %vm237_vm0, %v2409_v15  ;;  %2324 = vmatmul.mubr.msk.bf16.gmra.mxu1 %vm237_vm0, %v2410_v16 }
  0xca   :  { %v2173_v17 = vpop.f32.mrf.mxu0  ;;  %v2193_v18 = vpop.f32.mrf.mxu1 }
  0xcb   :  { %v1580_v30 = vand.u32 2147483647, %v2173_v17  ;;  %v1596_v33 = vand.u32 2147483647, %v2193_v18 }
  0xcc   :  { %v296_v19 = vpop.f32.mrf.mxu0  ;;  %v469_v20 = vpop.f32.mrf.mxu1 }
  0xcd   :  { %v1578_v24 = vand.u32 2147483647, %v296_v19  ;;  %v1594_v27 = vand.u32 2147483647, %v469_v20 }
  0xce   :  { %v2174_v21 = vpop.f32.mrf.mxu0  ;;  %v2194_v22 = vpop.f32.mrf.mxu1 }
  0xcf   :  { %v1581_v36 = vand.u32 2147483647, %v2174_v21  ;;  %v1597_v39 = vand.u32 2147483647, %v2194_v22 }
  0xd0   :  { %v299_v23 = vpop.f32.mrf.mxu0  ;;  %v472_v26 = vpop.f32.mrf.mxu1 }
  0xd1   :  { %v1579_v25 = vand.u32 2147483647, %v299_v23  ;;  %v1595_v28 = vand.u32 2147483647, %v472_v26 }
  0xd2   :  { %v2177_v29 = vpop.f32.mrf.mxu0  ;;  %v2197_v32 = vpop.f32.mrf.mxu1 }
  0xd3   :  { %v1706_v31 = vadd.f32 %v1579_v25, %v1578_v24  ;;  %v1727_v34 = vadd.f32 %v1595_v28, %v1594_v27  ;;  %v1584_v54 = vand.u32 2147483647, %v2177_v29  ;;  %v1600_v57 = vand.u32 2147483647, %v2197_v32 }
  0xd4   :  { %v312_v35 = vpop.f32.mrf.mxu0  ;;  %v485_v38 = vpop.f32.mrf.mxu1 }
  0xd5   :  { %v1707_v37 = vadd.f32 %v1706_v31, %v1580_v30  ;;  %v1728_v40 = vadd.f32 %v1727_v34, %v1596_v33  ;;  %v1582_v42 = vand.u32 2147483647, %v312_v35  ;;  %v1598_v45 = vand.u32 2147483647, %v485_v38 }
  0xd6   :  { %v2178_v41 = vpop.f32.mrf.mxu0  ;;  %v2198_v44 = vpop.f32.mrf.mxu1 }
  0xd7   :  { %v1708_v43 = vadd.f32 %v1707_v37, %v1581_v36  ;;  %v1729_v46 = vadd.f32 %v1728_v40, %v1597_v39  ;;  %v1585_v60 = vand.u32 2147483647, %v2178_v41  ;;  %v1601_v63 = vand.u32 2147483647, %v2198_v44 }
  0xd8   :  { %v315_v47 = vpop.f32.mrf.mxu0  ;;  %v488_v50 = vpop.f32.mrf.mxu1 }
  0xd9   :  { %v1709_v48 = vadd.f32 %v1708_v43, %v1582_v42  ;;  %v1583_v49 = vand.u32 2147483647, %v315_v47  ;;  %v1730_v51 = vadd.f32 %v1729_v46, %v1598_v45  ;;  %v1599_v52 = vand.u32 2147483647, %v488_v50 }
  0xda   :  { %v2181_v53 = vpop.f32.mrf.mxu0  ;;  %v2201_v56 = vpop.f32.mrf.mxu1 }
  0xdb   :  { %v1710_v55 = vadd.f32 %v1709_v48, %v1583_v49  ;;  %v1731_v58 = vadd.f32 %v1730_v51, %v1599_v52  ;;  %v1588_v14 = vand.u32 2147483647, %v2181_v53  ;;  %v1604_v17 = vand.u32 2147483647, %v2201_v56 }
  0xdc   :  { %v328_v59 = vpop.f32.mrf.mxu0  ;;  %v501_v62 = vpop.f32.mrf.mxu1 }
  0xdd   :  { %v1711_v61 = vadd.f32 %v1710_v55, %v1584_v54  ;;  %v1732_v0 = vadd.f32 %v1731_v58, %v1600_v57  ;;  %v1586_v2 = vand.u32 2147483647, %v328_v59  ;;  %v1602_v5 = vand.u32 2147483647, %v501_v62 }
  0xde   :  { %v2182_v1 = vpop.f32.mrf.mxu0  ;;  %v2202_v4 = vpop.f32.mrf.mxu1 }
  0xdf   :  { %v1712_v3 = vadd.f32 %v1711_v61, %v1585_v60  ;;  %v1733_v6 = vadd.f32 %v1732_v0, %v1601_v63  ;;  %v1589_v20 = vand.u32 2147483647, %v2182_v1  ;;  %v1605_v23 = vand.u32 2147483647, %v2202_v4 }
  0xe0   :  { %v331_v7 = vpop.f32.mrf.mxu0  ;;  %v504_v10 = vpop.f32.mrf.mxu1 }
  0xe1   :  { %v1713_v8 = vadd.f32 %v1712_v3, %v1586_v2  ;;  %v1587_v9 = vand.u32 2147483647, %v331_v7  ;;  %v1734_v11 = vadd.f32 %v1733_v6, %v1602_v5  ;;  %v1603_v12 = vand.u32 2147483647, %v504_v10 }
  0xe2   :  { %v2185_v13 = vpop.f32.mrf.mxu0  ;;  %v2205_v16 = vpop.f32.mrf.mxu1 }
  0xe3   :  { %v1714_v15 = vadd.f32 %v1713_v8, %v1587_v9  ;;  %v1735_v18 = vadd.f32 %v1734_v11, %v1603_v12  ;;  %v1592_v38 = vand.u32 2147483647, %v2185_v13  ;;  %v1608_v41 = vand.u32 2147483647, %v2205_v16 }
  0xe4   :  { %v344_v19 = vpop.f32.mrf.mxu0  ;;  %v517_v22 = vpop.f32.mrf.mxu1 }
  0xe5   :  { %v1715_v21 = vadd.f32 %v1714_v15, %v1588_v14  ;;  %v1736_v24 = vadd.f32 %v1735_v18, %v1604_v17  ;;  %v1590_v26 = vand.u32 2147483647, %v344_v19  ;;  %v1606_v29 = vand.u32 2147483647, %v517_v22 }
  0xe6   :  { %v2186_v25 = vpop.f32.mrf.mxu0  ;;  %v2206_v28 = vpop.f32.mrf.mxu1 }
  0xe7   :  { %v1716_v27 = vadd.f32 %v1715_v21, %v1589_v20  ;;  %v1737_v30 = vadd.f32 %v1736_v24, %v1605_v23  ;;  %v1593_v44 = vand.u32 2147483647, %v2186_v25  ;;  %v1609_v47 = vand.u32 2147483647, %v2206_v28 }
  0xe8   :  { %v347_v31 = vpop.f32.mrf.mxu0  ;;  %v520_v34 = vpop.f32.mrf.mxu1 }
  0xe9   :  { %v1717_v32 = vadd.f32 %v1716_v27, %v1590_v26  ;;  %v1591_v33 = vand.u32 2147483647, %v347_v31  ;;  %v1738_v35 = vadd.f32 %v1737_v30, %v1606_v29  ;;  %v1607_v36 = vand.u32 2147483647, %v520_v34  ;;  %v1570_v26 = vld [vmem:[#allocation2] sm:$0x1] }
  0xea   :  { %v2213_v37 = vpop.f32.mrf.mxu0  ;;  %v2233_v40 = vpop.f32.mrf.mxu1 }
  0xeb   :  { %v1718_v39 = vadd.f32 %v1717_v32, %v1591_v33  ;;  %v1739_v42 = vadd.f32 %v1738_v35, %v1607_v36  ;;  %v1612_v63 = vand.u32 2147483647, %v2213_v37  ;;  %v1628_v3 = vand.u32 2147483647, %v2233_v40  ;;  %v1571_v32 = vld [vmem:[#allocation2 + $0x1] sm:$0x1] }
  0xec   :  { %v642_v43 = vpop.f32.mrf.mxu0  ;;  %v815_v46 = vpop.f32.mrf.mxu1 }
  0xed   :  { %v1719_v45 = vadd.f32 %v1718_v39, %v1592_v38  ;;  %v1740_v48 = vadd.f32 %v1739_v42, %v1608_v41  ;;  %v1610_v55 = vand.u32 2147483647, %v642_v43  ;;  %v1626_v59 = vand.u32 2147483647, %v815_v46 }
  0xee   :  { %v2214_v49 = vpop.f32.mrf.mxu0  ;;  %v2234_v51 = vpop.f32.mrf.mxu1 }
  0xef   :  { %v1720_v50 = vadd.f32 %v1719_v45, %v1593_v44  ;;  %v1741_v52 = vadd.f32 %v1740_v48, %v1609_v47  ;;  %v1613_v7 = vand.u32 2147483647, %v2214_v49  ;;  %v1629_v11 = vand.u32 2147483647, %v2234_v51 }
  0xf0   :  { %v645_v53 = vpop.f32.mrf.mxu0  ;;  %v818_v57 = vpop.f32.mrf.mxu1 }
  0xf1   :  { %v1721_v54 = vrot.slane %v1720_v50, 4  ;;  %v1611_v56 = vand.u32 2147483647, %v645_v53  ;;  %v1742_v58 = vrot.slane %v1741_v52, 4  ;;  %v1627_v60 = vand.u32 2147483647, %v818_v57 }
  0xf2   :  { %v2217_v61 = vpop.f32.mrf.mxu0  ;;  %v2237_v1 = vpop.f32.mrf.mxu1 }
  0xf3   :  { %v1722_v62 = vadd.f32 %v1721_v54, %v1720_v50  ;;  %v1748_v0 = vadd.f32 %v1611_v56, %v1610_v55  ;;  %v1743_v2 = vadd.f32 %v1742_v58, %v1741_v52  ;;  %v1769_v4 = vadd.f32 %v1627_v60, %v1626_v59 }
  0xf4   :  { %v658_v5 = vpop.f32.mrf.mxu0  ;;  %v831_v9 = vpop.f32.mrf.mxu1  ;;  %v1616_v33 = vand.u32 2147483647, %v2217_v61  ;;  %v1632_v37 = vand.u32 2147483647, %v2237_v1 }
  0xf5   :  { %v1723_v6 = vrot.slane %v1722_v62, 2  ;;  %v1749_v8 = vadd.f32 %v1748_v0, %v1612_v63  ;;  %v1744_v10 = vrot.slane %v1743_v2, 2  ;;  %v1770_v12 = vadd.f32 %v1769_v4, %v1628_v3 }
  0xf6   :  { %v2218_v13 = vpop.f32.mrf.mxu0  ;;  %v1614_v15 = vand.u32 2147483647, %v658_v5  ;;  %v2238_v17 = vpop.f32.mrf.mxu1  ;;  %v1630_v19 = vand.u32 2147483647, %v831_v9 }
  0xf7   :  { %v1724_v14 = vadd.f32 %v1723_v6, %v1722_v62  ;;  %v1750_v16 = vadd.f32 %v1749_v8, %v1613_v7  ;;  %v1745_v18 = vadd.f32 %v1744_v10, %v1743_v2  ;;  %v1771_v20 = vadd.f32 %v1770_v12, %v1629_v11 }
  0xf8   :  { %v661_v21 = vpop.f32.mrf.mxu0  ;;  %v834_v25 = vpop.f32.mrf.mxu1  ;;  %v1617_v41 = vand.u32 2147483647, %v2218_v13  ;;  %v1633_v45 = vand.u32 2147483647, %v2238_v17 }
  0xf9   :  { %v1725_v22 = vrot.slane %v1724_v14, 1  ;;  %v1751_v23 = vadd.f32 %v1750_v16, %v1614_v15  ;;  %v1615_v24 = vand.u32 2147483647, %v661_v21  ;;  %v1746_v27 = vrot.slane %v1745_v18, 1 }
  0xfa   :  { %v1772_v28 = vadd.f32 %v1771_v20, %v1630_v19  ;;  %v1631_v29 = vand.u32 2147483647, %v834_v25  ;;  %v2221_v30 = vpop.f32.mrf.mxu0  ;;  %v2241_v35 = vpop.f32.mrf.mxu1 }
  0xfb   :  { %v1726_v31 = vadd.f32 %v1725_v22, %v1724_v14  ;;  %v1752_v34 = vadd.f32 %v1751_v23, %v1615_v24  ;;  %v1747_v36 = vadd.f32 %v1746_v27, %v1745_v18  ;;  %v1620_v60 = vand.u32 2147483647, %v2221_v30 }
  0xfc   :  { %v1773_v38 = vadd.f32 %v1772_v28, %v1631_v29  ;;  %v674_v39 = vpop.f32.mrf.mxu0  ;;  %v847_v43 = vpop.f32.mrf.mxu1  ;;  %v1636_v63 = vand.u32 2147483647, %v2241_v35 }
  0xfd   :  { %v1874_v40 = vadd.f32 %v1726_v31, %v1570_v26  ;;  %v1753_v42 = vadd.f32 %v1752_v34, %v1616_v33  ;;  %v1875_v44 = vadd.f32 %v1747_v36, %v1571_v32  ;;  %v1618_v48 = vand.u32 2147483647, %v674_v39 }
  0xfe   :  { %v1774_v46 = vadd.f32 %v1773_v38, %v1632_v37  ;;  %v2222_v47 = vpop.f32.mrf.mxu0  ;;  %v2242_v50 = vpop.f32.mrf.mxu1  ;;  %v1634_v51 = vand.u32 2147483647, %v847_v43 }
  0xff   :  { %1882 = vst [vmem:[#allocation2] sm:$0x1] %v1874_v40  ;;  %v1754_v49 = vadd.f32 %v1753_v42, %v1617_v41  ;;  %1883 = vst [vmem:[#allocation2 + $0x1] sm:$0x1] %v1875_v44  ;;  %v1621_v2 = vand.u32 2147483647, %v2222_v47 }
 0x100   :  { %v1775_v52 = vadd.f32 %v1774_v46, %v1633_v45  ;;  %v677_v53 = vpop.f32.mrf.mxu0  ;;  %v850_v56 = vpop.f32.mrf.mxu1  ;;  %v1637_v5 = vand.u32 2147483647, %v2242_v50 }
 0x101   :  { %v1755_v54 = vadd.f32 %v1754_v49, %v1618_v48  ;;  %v1619_v55 = vand.u32 2147483647, %v677_v53  ;;  %v1635_v58 = vand.u32 2147483647, %v850_v56 }
 0x102   :  { %v1776_v57 = vadd.f32 %v1775_v52, %v1634_v51  ;;  %v2225_v59 = vpop.f32.mrf.mxu0  ;;  %v2245_v62 = vpop.f32.mrf.mxu1 }
 0x103   :  { %v1756_v61 = vadd.f32 %v1755_v54, %v1619_v55  ;;  %v1624_v20 = vand.u32 2147483647, %v2225_v59  ;;  %v1640_v23 = vand.u32 2147483647, %v2245_v62 }
 0x104   :  { %v1777_v0 = vadd.f32 %v1776_v57, %v1635_v58  ;;  %v690_v1 = vpop.f32.mrf.mxu0  ;;  %v863_v4 = vpop.f32.mrf.mxu1 }
 0x105   :  { %v1757_v3 = vadd.f32 %v1756_v61, %v1620_v60  ;;  %v1622_v8 = vand.u32 2147483647, %v690_v1  ;;  %v1638_v11 = vand.u32 2147483647, %v863_v4 }
 0x106   :  { %v1778_v6 = vadd.f32 %v1777_v0, %v1636_v63  ;;  %v2226_v7 = vpop.f32.mrf.mxu0  ;;  %v2246_v10 = vpop.f32.mrf.mxu1 }
 0x107   :  { %v1758_v9 = vadd.f32 %v1757_v3, %v1621_v2  ;;  %v1625_v26 = vand.u32 2147483647, %v2226_v7  ;;  %v1641_v29 = vand.u32 2147483647, %v2246_v10 }
 0x108   :  { %v1779_v12 = vadd.f32 %v1778_v6, %v1637_v5  ;;  %v693_v13 = vpop.f32.mrf.mxu0  ;;  %v866_v16 = vpop.f32.mrf.mxu1 }
 0x109   :  { %v1759_v14 = vadd.f32 %v1758_v9, %v1622_v8  ;;  %v1623_v15 = vand.u32 2147483647, %v693_v13  ;;  %v1639_v18 = vand.u32 2147483647, %v866_v16  ;;  %v1572_v8 = vld [vmem:[#allocation2 + $0x2] sm:$0x1] }
 0x10a   :  { %v1780_v17 = vadd.f32 %v1779_v12, %v1638_v11  ;;  %v2253_v19 = vpop.f32.mrf.mxu0  ;;  %v2273_v22 = vpop.f32.mrf.mxu1 }
 0x10b   :  { %v1760_v21 = vadd.f32 %v1759_v14, %v1623_v15  ;;  %v1644_v45 = vand.u32 2147483647, %v2253_v19  ;;  %v1660_v49 = vand.u32 2147483647, %v2273_v22  ;;  %v1573_v14 = vld [vmem:[#allocation2 + $0x3] sm:$0x1] }
 0x10c   :  { %v1781_v24 = vadd.f32 %v1780_v17, %v1639_v18  ;;  %v988_v25 = vpop.f32.mrf.mxu0  ;;  %v1161_v28 = vpop.f32.mrf.mxu1 }
 0x10d   :  { %v1761_v27 = vadd.f32 %v1760_v21, %v1624_v20  ;;  %v1642_v37 = vand.u32 2147483647, %v988_v25  ;;  %v1658_v41 = vand.u32 2147483647, %v1161_v28 }
 0x10e   :  { %v1782_v30 = vadd.f32 %v1781_v24, %v1640_v23  ;;  %v2254_v31 = vpop.f32.mrf.mxu0  ;;  %v2274_v33 = vpop.f32.mrf.mxu1 }
 0x10f   :  { %v1762_v32 = vadd.f32 %v1761_v27, %v1625_v26  ;;  %v1645_v53 = vand.u32 2147483647, %v2254_v31  ;;  %v1661_v57 = vand.u32 2147483647, %v2274_v33 }
 0x110   :  { %v1783_v34 = vadd.f32 %v1782_v30, %v1641_v29  ;;  %v991_v35 = vpop.f32.mrf.mxu0  ;;  %v1164_v39 = vpop.f32.mrf.mxu1 }
 0x111   :  { %v1763_v36 = vrot.slane %v1762_v32, 4  ;;  %v1643_v38 = vand.u32 2147483647, %v991_v35  ;;  %v1659_v42 = vand.u32 2147483647, %v1164_v39 }
 0x112   :  { %v1784_v40 = vrot.slane %v1783_v34, 4  ;;  %v2257_v43 = vpop.f32.mrf.mxu0  ;;  %v2277_v47 = vpop.f32.mrf.mxu1 }
 0x113   :  { %v1764_v44 = vadd.f32 %v1763_v36, %v1762_v32  ;;  %v1790_v46 = vadd.f32 %v1643_v38, %v1642_v37  ;;  %v1811_v50 = vadd.f32 %v1659_v42, %v1658_v41  ;;  %v1648_v15 = vand.u32 2147483647, %v2257_v43 }
 0x114   :  { %v1785_v48 = vadd.f32 %v1784_v40, %v1783_v34  ;;  %v1004_v51 = vpop.f32.mrf.mxu0  ;;  %v1177_v55 = vpop.f32.mrf.mxu1  ;;  %v1664_v19 = vand.u32 2147483647, %v2277_v47 }
 0x115   :  { %v1765_v52 = vrot.slane %v1764_v44, 2  ;;  %v1791_v54 = vadd.f32 %v1790_v46, %v1644_v45  ;;  %v1812_v58 = vadd.f32 %v1811_v50, %v1660_v49  ;;  %v1646_v61 = vand.u32 2147483647, %v1004_v51 }
 0x116   :  { %v1786_v56 = vrot.slane %v1785_v48, 2  ;;  %v2258_v59 = vpop.f32.mrf.mxu0  ;;  %v2278_v63 = vpop.f32.mrf.mxu1  ;;  %v1662_v1 = vand.u32 2147483647, %v1177_v55 }
 0x117   :  { %v1766_v60 = vadd.f32 %v1765_v52, %v1764_v44  ;;  %v1792_v62 = vadd.f32 %v1791_v54, %v1645_v53  ;;  %v1813_v2 = vadd.f32 %v1812_v58, %v1661_v57  ;;  %v1649_v23 = vand.u32 2147483647, %v2258_v59 }
 0x118   :  { %v1787_v0 = vadd.f32 %v1786_v56, %v1785_v48  ;;  %v1007_v3 = vpop.f32.mrf.mxu0  ;;  %v1180_v7 = vpop.f32.mrf.mxu1  ;;  %v1665_v27 = vand.u32 2147483647, %v2278_v63 }
 0x119   :  { %v1767_v4 = vrot.slane %v1766_v60, 1  ;;  %v1793_v5 = vadd.f32 %v1792_v62, %v1646_v61  ;;  %v1647_v6 = vand.u32 2147483647, %v1007_v3  ;;  %v1814_v10 = vadd.f32 %v1813_v2, %v1662_v1 }
 0x11a   :  { %v1788_v9 = vrot.slane %v1787_v0, 1  ;;  %v1663_v11 = vand.u32 2147483647, %v1180_v7  ;;  %v2261_v12 = vpop.f32.mrf.mxu0  ;;  %v2281_v17 = vpop.f32.mrf.mxu1 }
 0x11b   :  { %v1768_v13 = vadd.f32 %v1767_v4, %v1766_v60  ;;  %v1794_v16 = vadd.f32 %v1793_v5, %v1647_v6  ;;  %v1652_v42 = vand.u32 2147483647, %v2261_v12  ;;  %v1668_v45 = vand.u32 2147483647, %v2281_v17 }
 0x11c   :  { %v1789_v18 = vadd.f32 %v1788_v9, %v1787_v0  ;;  %v1815_v20 = vadd.f32 %v1814_v10, %v1663_v11  ;;  %v1020_v21 = vpop.f32.mrf.mxu0  ;;  %v1193_v25 = vpop.f32.mrf.mxu1 }
 0x11d   :  { %v1876_v22 = vadd.f32 %v1768_v13, %v1572_v8  ;;  %v1795_v24 = vadd.f32 %v1794_v16, %v1648_v15  ;;  %v1650_v30 = vand.u32 2147483647, %v1020_v21  ;;  %v1666_v33 = vand.u32 2147483647, %v1193_v25 }
 0x11e   :  { %v1877_v26 = vadd.f32 %v1789_v18, %v1573_v14  ;;  %v1816_v28 = vadd.f32 %v1815_v20, %v1664_v19  ;;  %v2262_v29 = vpop.f32.mrf.mxu0  ;;  %v2282_v32 = vpop.f32.mrf.mxu1 }
 0x11f   :  { %1884 = vst [vmem:[#allocation2 + $0x2] sm:$0x1] %v1876_v22  ;;  %v1796_v31 = vadd.f32 %v1795_v24, %v1649_v23  ;;  %v1653_v48 = vand.u32 2147483647, %v2262_v29  ;;  %v1669_v51 = vand.u32 2147483647, %v2282_v32 }
 0x120   :  { %1885 = vst [vmem:[#allocation2 + $0x3] sm:$0x1] %v1877_v26  ;;  %v1817_v34 = vadd.f32 %v1816_v28, %v1665_v27  ;;  %v1023_v35 = vpop.f32.mrf.mxu0  ;;  %v1196_v38 = vpop.f32.mrf.mxu1 }
 0x121   :  { %v1797_v36 = vadd.f32 %v1796_v31, %v1650_v30  ;;  %v1651_v37 = vand.u32 2147483647, %v1023_v35  ;;  %v1667_v40 = vand.u32 2147483647, %v1196_v38 }
 0x122   :  { %v1818_v39 = vadd.f32 %v1817_v34, %v1666_v33  ;;  %v2265_v41 = vpop.f32.mrf.mxu0  ;;  %v2285_v44 = vpop.f32.mrf.mxu1 }
 0x123   :  { %v1798_v43 = vadd.f32 %v1797_v36, %v1651_v37  ;;  %v1656_v2 = vand.u32 2147483647, %v2265_v41  ;;  %v1672_v5 = vand.u32 2147483647, %v2285_v44 }
 0x124   :  { %v1819_v46 = vadd.f32 %v1818_v39, %v1667_v40  ;;  %v1036_v47 = vpop.f32.mrf.mxu0  ;;  %v1209_v50 = vpop.f32.mrf.mxu1 }
 0x125   :  { %v1799_v49 = vadd.f32 %v1798_v43, %v1652_v42  ;;  %v1654_v54 = vand.u32 2147483647, %v1036_v47  ;;  %v1670_v57 = vand.u32 2147483647, %v1209_v50 }
 0x126   :  { %v1820_v52 = vadd.f32 %v1819_v46, %v1668_v45  ;;  %v2266_v53 = vpop.f32.mrf.mxu0  ;;  %v2286_v56 = vpop.f32.mrf.mxu1 }
 0x127   :  { %v1800_v55 = vadd.f32 %v1799_v49, %v1653_v48  ;;  %v1657_v8 = vand.u32 2147483647, %v2266_v53  ;;  %v1673_v11 = vand.u32 2147483647, %v2286_v56 }
 0x128   :  { %v1821_v58 = vadd.f32 %v1820_v52, %v1669_v51  ;;  %v1039_v59 = vpop.f32.mrf.mxu0  ;;  %v1212_v62 = vpop.f32.mrf.mxu1 }
 0x129   :  { %v1801_v60 = vadd.f32 %v1800_v55, %v1654_v54  ;;  %v1655_v61 = vand.u32 2147483647, %v1039_v59  ;;  %v1671_v0 = vand.u32 2147483647, %v1212_v62  ;;  %v1574_v54 = vld [vmem:[#allocation2 + $0x4] sm:$0x1] }
 0x12a   :  { %v1822_v63 = vadd.f32 %v1821_v58, %v1670_v57  ;;  %v2293_v1 = vpop.f32.mrf.mxu0  ;;  %v2313_v4 = vpop.f32.mrf.mxu1 }
 0x12b   :  { %v1802_v3 = vadd.f32 %v1801_v60, %v1655_v61  ;;  %v1676_v27 = vand.u32 2147483647, %v2293_v1  ;;  %v1692_v31 = vand.u32 2147483647, %v2313_v4  ;;  %v1575_v60 = vld [vmem:[#allocation2 + $0x5] sm:$0x1] }
 0x12c   :  { %v1823_v6 = vadd.f32 %v1822_v63, %v1671_v0  ;;  %v1334_v7 = vpop.f32.mrf.mxu0  ;;  %v1507_v10 = vpop.f32.mrf.mxu1 }
 0x12d   :  { %v1803_v9 = vadd.f32 %v1802_v3, %v1656_v2  ;;  %v1674_v19 = vand.u32 2147483647, %v1334_v7  ;;  %v1690_v23 = vand.u32 2147483647, %v1507_v10 }
 0x12e   :  { %v1824_v12 = vadd.f32 %v1823_v6, %v1672_v5  ;;  %v2294_v13 = vpop.f32.mrf.mxu0  ;;  %v2314_v15 = vpop.f32.mrf.mxu1 }
 0x12f   :  { %v1804_v14 = vadd.f32 %v1803_v9, %v1657_v8  ;;  %v1677_v35 = vand.u32 2147483647, %v2294_v13  ;;  %v1693_v39 = vand.u32 2147483647, %v2314_v15 }
 0x130   :  { %v1825_v16 = vadd.f32 %v1824_v12, %v1673_v11  ;;  %v1337_v17 = vpop.f32.mrf.mxu0  ;;  %v1510_v21 = vpop.f32.mrf.mxu1 }
 0x131   :  { %v1805_v18 = vrot.slane %v1804_v14, 4  ;;  %v1675_v20 = vand.u32 2147483647, %v1337_v17  ;;  %v1691_v24 = vand.u32 2147483647, %v1510_v21 }
 0x132   :  { %v1826_v22 = vrot.slane %v1825_v16, 4  ;;  %v2297_v25 = vpop.f32.mrf.mxu0  ;;  %v2317_v29 = vpop.f32.mrf.mxu1 }
 0x133   :  { %v1806_v26 = vadd.f32 %v1805_v18, %v1804_v14  ;;  %v1832_v28 = vadd.f32 %v1675_v20, %v1674_v19  ;;  %v1853_v32 = vadd.f32 %v1691_v24, %v1690_v23  ;;  %v1680_v61 = vand.u32 2147483647, %v2297_v25 }
 0x134   :  { %v1827_v30 = vadd.f32 %v1826_v22, %v1825_v16  ;;  %v1350_v33 = vpop.f32.mrf.mxu0  ;;  %v1523_v37 = vpop.f32.mrf.mxu1  ;;  %v1696_v1 = vand.u32 2147483647, %v2317_v29 }
 0x135   :  { %v1807_v34 = vrot.slane %v1806_v26, 2  ;;  %v1833_v36 = vadd.f32 %v1832_v28, %v1676_v27  ;;  %v1854_v40 = vadd.f32 %v1853_v32, %v1692_v31  ;;  %v1678_v43 = vand.u32 2147483647, %v1350_v33 }
 0x136   :  { %v1828_v38 = vrot.slane %v1827_v30, 2  ;;  %v2298_v41 = vpop.f32.mrf.mxu0  ;;  %v2318_v45 = vpop.f32.mrf.mxu1  ;;  %v1694_v47 = vand.u32 2147483647, %v1523_v37 }
 0x137   :  { %v1808_v42 = vadd.f32 %v1807_v34, %v1806_v26  ;;  %v1834_v44 = vadd.f32 %v1833_v36, %v1677_v35  ;;  %v1855_v48 = vadd.f32 %v1854_v40, %v1693_v39  ;;  %v1681_v5 = vand.u32 2147483647, %v2298_v41 }
 0x138   :  { %v1829_v46 = vadd.f32 %v1828_v38, %v1827_v30  ;;  %v1353_v49 = vpop.f32.mrf.mxu0  ;;  %v1526_v53 = vpop.f32.mrf.mxu1  ;;  %v1697_v9 = vand.u32 2147483647, %v2318_v45 }
 0x139   :  { %v1809_v50 = vrot.slane %v1808_v42, 1  ;;  %v1835_v51 = vadd.f32 %v1834_v44, %v1678_v43  ;;  %v1679_v52 = vand.u32 2147483647, %v1353_v49  ;;  %v1856_v56 = vadd.f32 %v1855_v48, %v1694_v47 }
 0x13a   :  { %v1830_v55 = vrot.slane %v1829_v46, 1  ;;  %v1695_v57 = vand.u32 2147483647, %v1526_v53  ;;  %v2301_v58 = vpop.f32.mrf.mxu0  ;;  %v2321_v63 = vpop.f32.mrf.mxu1 }
 0x13b   :  { %v1810_v59 = vadd.f32 %v1809_v50, %v1808_v42  ;;  %v1836_v62 = vadd.f32 %v1835_v51, %v1679_v52  ;;  %v1684_v24 = vand.u32 2147483647, %v2301_v58  ;;  %v1700_v27 = vand.u32 2147483647, %v2321_v63 }
 0x13c   :  { %v1831_v0 = vadd.f32 %v1830_v55, %v1829_v46  ;;  %v1857_v2 = vadd.f32 %v1856_v56, %v1695_v57  ;;  %v1366_v3 = vpop.f32.mrf.mxu0  ;;  %v1539_v7 = vpop.f32.mrf.mxu1 }
 0x13d   :  { %v1878_v4 = vadd.f32 %v1810_v59, %v1574_v54  ;;  %v1837_v6 = vadd.f32 %v1836_v62, %v1680_v61  ;;  %v1682_v12 = vand.u32 2147483647, %v1366_v3  ;;  %v1698_v15 = vand.u32 2147483647, %v1539_v7  ;;  %v1893_v61 = vld [vmem:[#allocation2] sm:$0x1] }
 0x13e   :  { %v1879_v8 = vadd.f32 %v1831_v0, %v1575_v60  ;;  %v1858_v10 = vadd.f32 %v1857_v2, %v1696_v1  ;;  %v2302_v11 = vpop.f32.mrf.mxu0  ;;  %v2322_v14 = vpop.f32.mrf.mxu1  ;;  %v1894_v62 = vld [vmem:[#allocation2 + $0x1] sm:$0x1]  ;;  %v1895_v1 = vld [vmem:[#allocation2 + $0x2] sm:$0x1]  ;;  %v1902_v3 = vsel %vm1901_vm1, %v1893_v61, 0.0 }
 0x13f   :  { %1886 = vst [vmem:[#allocation2 + $0x4] sm:$0x1] %v1878_v4  ;;  %v1838_v13 = vadd.f32 %v1837_v6, %v1681_v5  ;;  %v1685_v30 = vand.u32 2147483647, %v2302_v11  ;;  %v1701_v33 = vand.u32 2147483647, %v2322_v14 }
 0x140   :  { %1887 = vst [vmem:[#allocation2 + $0x5] sm:$0x1] %v1879_v8  ;;  %v1859_v16 = vadd.f32 %v1858_v10, %v1697_v9  ;;  %v1369_v17 = vpop.f32.mrf.mxu0  ;;  %v1542_v20 = vpop.f32.mrf.mxu1  ;;  %v1903_v4 = vsel %vm1901_vm1, %v1894_v62, 0.0  ;;  %v1905_v7 = vsel %vm1901_vm1, %v1895_v1, 0.0  ;;  %v1576_v8 = vld [vmem:[#allocation2 + $0x6] sm:$0x1] }
 0x141   :  { %v1839_v18 = vadd.f32 %v1838_v13, %v1682_v12  ;;  %v1683_v19 = vand.u32 2147483647, %v1369_v17  ;;  %v1699_v22 = vand.u32 2147483647, %v1542_v20  ;;  %v1904_v10 = vadd.f32 %v1903_v4, %v1902_v3  ;;  %v1577_v12 = vld [vmem:[#allocation2 + $0x7] sm:$0x1] }
 0x142   :  { %v1860_v21 = vadd.f32 %v1859_v16, %v1698_v15  ;;  %v2305_v23 = vpop.f32.mrf.mxu0  ;;  %v2325_v26 = vpop.f32.mrf.mxu1  ;;  %v1896_v14 = vld [vmem:[#allocation2 + $0x3] sm:$0x1] }
 0x143   :  { %v1840_v25 = vadd.f32 %v1839_v18, %v1683_v19  ;;  %v1688_v47 = vand.u32 2147483647, %v2305_v23  ;;  %v1704_v49 = vand.u32 2147483647, %v2325_v26  ;;  %v1906_v16 = vadd.f32 %v1905_v7, %v1904_v10 }
 0x144   :  { %v1861_v28 = vadd.f32 %v1860_v21, %v1699_v22  ;;  %v1382_v29 = vpop.f32.mrf.mxu0  ;;  %v1555_v32 = vpop.f32.mrf.mxu1  ;;  %v1907_v19 = vsel %vm1901_vm1, %v1896_v14, 0.0 }
 0x145   :  { %v1841_v31 = vadd.f32 %v1840_v25, %v1684_v24  ;;  %v1686_v36 = vand.u32 2147483647, %v1382_v29  ;;  %v1702_v39 = vand.u32 2147483647, %v1555_v32  ;;  %v1908_v21 = vadd.f32 %v1907_v19, %v1906_v16 }
 0x146   :  { %v1862_v34 = vadd.f32 %v1861_v28, %v1700_v27  ;;  %v2306_v35 = vpop.f32.mrf.mxu0  ;;  %v2326_v38 = vpop.f32.mrf.mxu1  ;;  %v1897_v15 = vld [vmem:[#allocation2 + $0x4] sm:$0x1] }
 0x147   :  { %v1842_v37 = vadd.f32 %v1841_v31, %v1685_v30  ;;  %v1689_v51 = vand.u32 2147483647, %v2306_v35  ;;  %v1705_v53 = vand.u32 2147483647, %v2326_v38  ;;  %v1909_v20 = vsel %vm1901_vm1, %v1897_v15, 0.0 }
 0x148   :  { %v1863_v40 = vadd.f32 %v1862_v34, %v1701_v33  ;;  %v1385_v41 = vpop.f32.mrf.mxu0  ;;  %v1558_v44 = vpop.f32.mrf.mxu1  ;;  %v1898_v22 = vld [vmem:[#allocation2 + $0x5] sm:$0x1]  ;;  %v1910_v23 = vadd.f32 %v1909_v20, %v1908_v21 }
 0x149   :  { %v1843_v42 = vadd.f32 %v1842_v37, %v1686_v36  ;;  %v1687_v43 = vand.u32 2147483647, %v1385_v41  ;;  %v1703_v46 = vand.u32 2147483647, %v1558_v44  ;;  %v1911_v24 = vsel %vm1901_vm1, %v1898_v22, 0.0 }
 0x14a   :  { %v1864_v45 = vadd.f32 %v1863_v40, %v1702_v39  ;;  %v1912_v26 = vadd.f32 %v1911_v24, %v1910_v23 }
 0x14b   :  { %v1844_v48 = vadd.f32 %v1843_v42, %v1687_v43 }
 0x14c   :  { %v1865_v50 = vadd.f32 %v1864_v45, %v1703_v46 }
 0x14d   :  { %v1845_v52 = vadd.f32 %v1844_v48, %v1688_v47 }
 0x14e   :  { %v1866_v54 = vadd.f32 %v1865_v50, %v1704_v49 }
 0x14f   :  { %v1846_v55 = vadd.f32 %v1845_v52, %v1689_v51 }
 0x150   :  { %v1867_v56 = vadd.f32 %v1866_v54, %v1705_v53 }
 0x151   :  { %v1847_v57 = vrot.slane %v1846_v55, 4 }
 0x152   :  { %v1868_v58 = vrot.slane %v1867_v56, 4 }
 0x153   :  { %v1848_v59 = vadd.f32 %v1847_v57, %v1846_v55 }
 0x154   :  { %v1869_v60 = vadd.f32 %v1868_v58, %v1867_v56 }
 0x155   :  { %v1849_v63 = vrot.slane %v1848_v59, 2 }
 0x156   :  { %v1870_v0 = vrot.slane %v1869_v60, 2 }
 0x157   :  { %v1850_v2 = vadd.f32 %v1849_v63, %v1848_v59 }
 0x158   :  { %v1871_v5 = vadd.f32 %v1870_v0, %v1869_v60 }
 0x159   :  { %v1851_v6 = vrot.slane %v1850_v2, 1 }
 0x15a   :  { %v1872_v9 = vrot.slane %v1871_v5, 1 }
 0x15b   :  { %v1852_v11 = vadd.f32 %v1851_v6, %v1850_v2 }
 0x15c   :  { %v1873_v13 = vadd.f32 %v1872_v9, %v1871_v5 }
 0x15d   :  { %v1880_v17 = vadd.f32 %v1852_v11, %v1576_v8 }
 0x15e   :  { %v1881_v18 = vadd.f32 %v1873_v13, %v1577_v12 }
 0x15f   :  { %1888 = vst [vmem:[#allocation2 + $0x6] sm:$0x1] %v1880_v17 }
 0x160   :  { %1889 = vst [vmem:[#allocation2 + $0x7] sm:$0x1] %v1881_v18 }
 0x166   :  { %v1899_v25 = vld [vmem:[#allocation2 + $0x6] sm:$0x1] }
 0x167   :  { %v1900_v27 = vld [vmem:[#allocation2 + $0x7] sm:$0x1]  ;;  %v1913_v28 = vsel %vm1901_vm1, %v1899_v25, 0.0 }
 0x168   :  { %v1914_v29 = vadd.f32 %v1913_v28, %v1912_v26  ;;  %v1915_v30 = vsel %vm1901_vm1, %v1900_v27, 0.0 }
 0x16a   :  { %v1916_v31 = vadd.f32 %v1915_v30, %v1914_v29 }
 0x16c   :  { %1917 = vadd.xlane.f32.xlu0 %v1916_v31 }
 0x1f5   :  { %v1918_v32 = vpop.xlane.xlu0 %1917 }
 0x1f6   :  { %v1919_v33 = vrot.slane %v1918_v32, 4 }
 0x1f8   :  { %v1920_v34 = vadd.f32 %v1919_v33, %v1918_v32 }
 0x1fa   :  { %v1921_v35 = vrot.slane %v1920_v34, 2 }
 0x1fc   :  { %v1922_v36 = vadd.f32 %v1921_v35, %v1920_v34 }
 0x1fe   :  { %v1923_v37 = vrot.slane %v1922_v36, 1 }
 0x200   :  { %v1924_v38 = vadd.f32 %v1923_v37, %v1922_v36 }
 0x202   :  { %2327 = vpush %v1924_v38 }
 0x233   :  { %s2328_s28 = spop %2327 }
 0x234   :  { %v1926_v39 = vstv %s2328_s28 }
 0x235   :  { %1928 = vst.msk [vmem:[#allocation3] sm:$0x1] %vm1927_vm2, %v1926_v39 }
 0x236   :  { %2422 = shalt.err (!%p2419_p4)
}
 0x237   :  { %1938 = dma.vmem_to_hbm [thread:$0]  %s1936_s27, 16, %s2767_s2, [#allocation4]  }
 0x238   :  { %2431 = dma.done.wait [#allocation4], 16  }
 0x239   :  { %2432 = vsyncadd [#allocation4], 4294967280 }
 0x23a   :  { %1942 = vsyncpa [#allocation4], 1 }

</bundles_post_ra>
